<compile_context>
chip_gen: v7x
topology: tpu7x:2x2x1
jax: 0.10.0
libtpu: 0.0.40
codegen_flags: <defaults>
</compile_context>

<pallas_src>
import functools

import jax
import jax.numpy as jnp
from jax.experimental import pallas as pl
from jax.experimental.pallas import tpu as pltpu


def _focal_loss_kernel(x_ref, t_ref, o_ref, *, alpha, gamma, n_rows, tile_n):
    i = pl.program_id(0)

    x = x_ref[...].astype(jnp.float32)   # (tile_n, C) logits (f32 on-chip)
    t = t_ref[...]                       # (tile_n, 1) int32 targets

    # Numerically-stable log-sum-exp per row.
    m = jnp.max(x, axis=-1, keepdims=True)                               # (tile_n, 1)
    lse = m + jnp.log(jnp.sum(jnp.exp(x - m), axis=-1, keepdims=True))   # (tile_n, 1)

    # Target-class logit via select-reduce. Note: an out-of-range target index
    # yields an empty select (tgt_logit = 0, ce = lse) instead of erroring
    # like PyTorch's cross_entropy; documented, accepted behavior.
    col = jax.lax.broadcasted_iota(jnp.int32, x.shape, dimension=1)       # (tile_n, C)
    tgt_logit = jnp.sum(jnp.where(col == t, x, 0.0), axis=-1, keepdims=True)

    # Cross-entropy per row: CE_i = logsumexp(x_i) - x_i[target_i]
    ce = lse - tgt_logit                                                  # (tile_n, 1)
    pt = jnp.exp(-ce)
    u = 1.0 - pt

    # (1 - pt) ** gamma.
    g = float(gamma)
    if g == int(g) and 0 <= int(g) <= 16:
        # Square-and-multiply: pure VPU multiplies (gamma=2 -> one u*u),
        # no EUP exp/log and no log(0) corner when pt == 1.
        e = int(g)
        w = None
        base = u
        while e > 0:
            if e & 1:
                w = base if w is None else w * base
            e >>= 1
            if e:
                base = base * base
        if w is None:          # gamma == 0
            w = jnp.ones_like(u)
    else:
        # fp rounding can make ce slightly negative -> u < 0, which would NaN
        # a fractional power; clamp before the EUP pow.
        w = jnp.maximum(u, 0.0) ** jnp.float32(g)

    focal = jnp.float32(alpha) * w * ce                                   # (tile_n, 1)

    lane = jax.lax.broadcasted_iota(jnp.int32, (1, 128), dimension=1)

    if n_rows % tile_n == 0:
        # No padded rows anywhere: steady-state path, no masking work at all.
        o_ref[...] = jnp.where(lane == 0, jnp.sum(focal), 0.0)
    else:
        last = pl.num_programs(0) - 1

        @pl.when(i != last)
        def _():
            o_ref[...] = jnp.where(lane == 0, jnp.sum(focal), 0.0)

        @pl.when(i == last)
        def _():
            # Padded tail rows may hold garbage (possibly NaN/Inf). jnp.where
            # is a hardware select, so the unselected operand does NOT
            # propagate (do not replace this with a multiply-by-mask).
            row = (jax.lax.broadcasted_iota(jnp.int32, focal.shape, dimension=0)
                   + i * tile_n)
            masked = jnp.where(row < n_rows, focal, 0.0)
            o_ref[...] = jnp.where(lane == 0, jnp.sum(masked), 0.0)


def _vmem_capacity_bytes():
    """Physical VMEM of the current generation (conservative fallback)."""
    try:
        info = pltpu.get_tpu_info()
        cap = getattr(info, "vmem_capacity_bytes", None)
        if cap:
            return int(cap)
    except Exception:
        pass
    return 64 * 1024 * 1024   # v7x per-TensorCore value: safe everywhere.


def focal_loss(inputs, targets, alpha=1.0, gamma=2.0):
    """Pallas TPU implementation of FocalLoss.forward.

    inputs:  (N, C) float logits
    targets: (N,)   integer class indices
    returns: scalar float32 loss (mean over the batch)
    """
    n, c = inputs.shape
    itemsize = jnp.dtype(inputs.dtype).itemsize
    sublane = 16 if itemsize == 2 else 8    # bf16 packs 2 rows per sublane

    # Per-row VMEM footprint of one grid step (both inputs double-buffered):
    #   * logits row: lane-padded to a multiple of 128 columns in VMEM
    #   * targets row: a (tile_n, 1) int32 block is lane-padded to 128 lanes
    #     -> 512 B/row per buffer (dominates for narrow C; must be budgeted).
    c_pad = -(-c // 128) * 128
    row_bytes = 2 * c_pad * itemsize + 2 * 128 * 4

    # Generation-aware budget: <= ~60% of physical VMEM for the input blocks,
    # capped at 40 MiB (already far beyond the ~2-4 MiB/block roofline
    # plateau); leaves headroom for outputs / compiler scratch on v7x's 64 MiB.
    vmem_cap = _vmem_capacity_bytes()
    budget_bytes = min(int(vmem_cap * 0.6), 40 * 1024 * 1024)

    rows_in_budget = (budget_bytes // row_bytes) // sublane * sublane
    tile_n = max(sublane, rows_in_budget)
    # Don't make the tile bigger than the (sublane-rounded) batch itself.
    tile_n = min(tile_n, -(-n // sublane) * sublane)

    num_tiles = -(-n // tile_n)             # ceil div
    t2 = targets.astype(jnp.int32).reshape(n, 1)

    kernel = functools.partial(
        _focal_loss_kernel,
        alpha=float(alpha), gamma=float(gamma), n_rows=n, tile_n=tile_n,
    )

    vmem_limit = int(min(budget_bytes + (8 << 20), 48 * 1024 * 1024, vmem_cap))

    partials = pl.pallas_call(
        kernel,
        out_shape=jax.ShapeDtypeStruct((1, 128 * num_tiles), jnp.float32),
        grid=(num_tiles,),
        in_specs=[
            pl.BlockSpec((tile_n, c), lambda i: (i, 0)),   # logits row-tile
            pl.BlockSpec((tile_n, 1), lambda i: (i, 0)),   # targets row-tile
        ],
        out_specs=pl.BlockSpec((1, 128), lambda i: (0, i)),  # lane-dense partials
        compiler_params=pltpu.CompilerParams(
            dimension_semantics=("parallel",),   # disjoint tiles: megacore-shardable
            vmem_limit_bytes=vmem_limit,
        ),
    )(inputs, t2)

    # Tiny final reduction (one nonzero lane per tile) + mean over the batch.
    return jnp.sum(partials) / jnp.float32(n)


def _reference_focal_loss(inputs, targets, alpha=1.0, gamma=2.0):
    logp = jax.nn.log_softmax(inputs.astype(jnp.float32), axis=-1)
    ce = -jnp.take_along_axis(logp, targets[:, None].astype(jnp.int32), axis=-1)[:, 0]
    pt = jnp.exp(-ce)
    return jnp.mean(alpha * (1.0 - pt) ** gamma * ce)


if __name__ == "__main__":
    key = jax.random.PRNGKey(0)
    k_x, k_t = jax.random.split(key)

    # Matches `inputs = torch.randn(3, 7)` in the PyTorch module.
    N, C = 3, 7
    x = jax.random.normal(k_x, (N, C), dtype=jnp.float32)
    targets = jax.random.randint(k_t, (N,), 0, C, dtype=jnp.int32)

    loss = focal_loss(x, targets, alpha=1.0, gamma=2.0)
    jax.block_until_ready(loss)
    ref = _reference_focal_loss(x, targets, alpha=1.0, gamma=2.0)
    assert jnp.allclose(loss, ref, atol=1e-5, rtol=1e-5), (loss, ref)

    # Non-integer gamma fallback (exercises the clamped EUP pow path).
    loss_g = focal_loss(x, targets, alpha=0.5, gamma=1.5)
    jax.block_until_ready(loss_g)
    ref_g = _reference_focal_loss(x, targets, alpha=0.5, gamma=1.5)
    assert jnp.allclose(loss_g, ref_g, atol=1e-5, rtol=1e-5), (loss_g, ref_g)

    # Tiled / masked path (N not a multiple of the sublane-rounded tile).
    N2, C2 = 1037, 257
    x2 = jax.random.normal(k_x, (N2, C2), dtype=jnp.float32)
    t2 = jax.random.randint(k_t, (N2,), 0, C2, dtype=jnp.int32)
    loss2 = focal_loss(x2, t2, alpha=0.25, gamma=2.0)
    jax.block_until_ready(loss2)
    ref2 = _reference_focal_loss(x2, t2, alpha=0.25, gamma=2.0)
    assert jnp.allclose(loss2, ref2, atol=1e-5, rtol=1e-5), (loss2, ref2)

    print("KERNEL_OK")
</pallas_src>

<mosaic_0001>
module attributes {stable_mosaic.version = 11 : i64} {
  func.func @_focal_loss_kernel(%arg0: i32, %arg1: memref<8x7xf32, #tpu.memory_space<vmem>>, %arg2: memref<8x1xi32, #tpu.memory_space<vmem>>, %arg3: memref<1x128xf32, #tpu.memory_space<vmem>>) attributes {dimension_semantics = [#tpu.dimension_semantics<parallel>], iteration_bounds = array<i64: 1>, scalar_prefetch = 0 : i64, scratch_operands = 0 : i64, tpu.core_type = #tpu.core_type<tc>, window_params = [{transform_indices = @transform_0, window_bounds = array<i64: 8, 7>}, {transform_indices = @transform_1, window_bounds = array<i64: 8, 1>}, {transform_indices = @transform_2, window_bounds = array<i64: 1, 128>}]} {
    %c0 = arith.constant 0 : index
    %c0_0 = arith.constant 0 : index
    %0 = vector.load %arg1[%c0, %c0_0] : memref<8x7xf32, #tpu.memory_space<vmem>>, vector<8x7xf32>
    %c0_1 = arith.constant 0 : index
    %c0_2 = arith.constant 0 : index
    %1 = vector.load %arg2[%c0_1, %c0_2] : memref<8x1xi32, #tpu.memory_space<vmem>>, vector<8x1xi32>
    %cst = arith.constant dense<0xFF800000> : vector<8xf32>
    %2 = vector.multi_reduction <maximumf>, %0, %cst [1] : vector<8x7xf32> to vector<8xf32>
    %3 = vector.shape_cast %2 : vector<8xf32> to vector<8x1xf32>
    %4 = vector.broadcast %3 : vector<8x1xf32> to vector<8x7xf32>
    %5 = arith.subf %0, %4 : vector<8x7xf32>
    %6 = math.exp %5 : vector<8x7xf32>
    %cst_3 = arith.constant dense<0.000000e+00> : vector<8xf32>
    %7 = vector.multi_reduction <add>, %6, %cst_3 [1] : vector<8x7xf32> to vector<8xf32>
    %8 = vector.shape_cast %7 : vector<8xf32> to vector<8x1xf32>
    %9 = math.log %8 : vector<8x1xf32>
    %10 = arith.addf %3, %9 : vector<8x1xf32>
    %11 = tpu.iota {dimensions = array<i32: 1>} : vector<8x7xi32>
    %12 = vector.broadcast %1 : vector<8x1xi32> to vector<8x7xi32>
    %13 = arith.cmpi eq, %11, %12 : vector<8x7xi32>
    %cst_4 = arith.constant 0.000000e+00 : f32
    %14 = vector.broadcast %cst_4 : f32 to vector<8x7xf32>
    %15 = arith.select %13, %0, %14 : vector<8x7xi1>, vector<8x7xf32>
    %cst_5 = arith.constant dense<0.000000e+00> : vector<8xf32>
    %16 = vector.multi_reduction <add>, %15, %cst_5 [1] : vector<8x7xf32> to vector<8xf32>
    %17 = vector.shape_cast %16 : vector<8xf32> to vector<8x1xf32>
    %18 = arith.subf %10, %17 : vector<8x1xf32>
    %cst_6 = arith.constant 0.000000e+00 : f32
    %19 = vector.broadcast %cst_6 : f32 to vector<8x1xf32>
    %20 = arith.subf %19, %18 : vector<8x1xf32>
    %21 = math.exp %20 : vector<8x1xf32>
    %cst_7 = arith.constant 1.000000e+00 : f32
    %22 = vector.broadcast %cst_7 : f32 to vector<8x1xf32>
    %23 = arith.subf %22, %21 : vector<8x1xf32>
    %24 = arith.mulf %23, %23 : vector<8x1xf32>
    %cst_8 = arith.constant 1.000000e+00 : f32
    %25 = vector.broadcast %cst_8 : f32 to vector<8x1xf32>
    %26 = arith.mulf %25, %24 : vector<8x1xf32>
    %27 = arith.mulf %26, %18 : vector<8x1xf32>
    %28 = tpu.iota {dimensions = array<i32: 1>} : vector<1x128xi32>
    %c0_i32 = arith.constant 0 : i32
    %29 = arith.cmpi ne, %arg0, %c0_i32 : i32
    %30 = arith.extui %29 : i1 to i32
    %c0_i32_9 = arith.constant 0 : i32
    %31 = arith.cmpi ne, %30, %c0_i32_9 : i32
    scf.if %31 {
      %c0_i32_12 = arith.constant 0 : i32
      %35 = vector.broadcast %c0_i32_12 : i32 to vector<1x128xi32>
      %36 = arith.cmpi eq, %28, %35 : vector<1x128xi32>
      %37 = vector.shape_cast %27 : vector<8x1xf32> to vector<1x8x1xf32>
      %cst_13 = arith.constant dense<0.000000e+00> : vector<1xf32>
      %38 = vector.multi_reduction <add>, %37, %cst_13 [1, 2] : vector<1x8x1xf32> to vector<1xf32>
      %39 = vector.shape_cast %38 : vector<1xf32> to vector<1x1x1xf32>
      %40 = vector.extract %39[0, 0, 0] : f32 from vector<1x1x1xf32>
      %cst_14 = arith.constant 0.000000e+00 : f32
      %41 = vector.broadcast %40 : f32 to vector<1x128xf32>
      %42 = vector.broadcast %cst_14 : f32 to vector<1x128xf32>
      %43 = arith.select %36, %41, %42 : vector<1x128xi1>, vector<1x128xf32>
      %c0_15 = arith.constant 0 : index
      %c0_16 = arith.constant 0 : index
      %44 = vector.load %arg3[%c0_15, %c0_16] : memref<1x128xf32, #tpu.memory_space<vmem>>, vector<1x128xf32>
      tpu.vector_store %arg3[%c0_15, %c0_16], %43 {strides = array<i32>} : memref<1x128xf32, #tpu.memory_space<vmem>>, vector<1x128xf32>,
    } else {
    }
    %c0_i32_10 = arith.constant 0 : i32
    %32 = arith.cmpi eq, %arg0, %c0_i32_10 : i32
    %33 = arith.extui %32 : i1 to i32
    %c0_i32_11 = arith.constant 0 : i32
    %34 = arith.cmpi ne, %33, %c0_i32_11 : i32
    scf.if %34 {
      %35 = tpu.iota {dimensions = array<i32: 0>} : vector<8x1xi32>
      %c8_i32 = arith.constant 8 : i32
      %36 = arith.muli %arg0, %c8_i32 : i32
      %37 = vector.broadcast %36 : i32 to vector<8x1xi32>
      %38 = arith.addi %35, %37 : vector<8x1xi32>
      %c3_i32 = arith.constant 3 : i32
      %39 = vector.broadcast %c3_i32 : i32 to vector<8x1xi32>
      %40 = arith.cmpi slt, %38, %39 : vector<8x1xi32>
      %cst_12 = arith.constant 0.000000e+00 : f32
      %41 = vector.broadcast %cst_12 : f32 to vector<8x1xf32>
      %42 = arith.select %40, %27, %41 : vector<8x1xi1>, vector<8x1xf32>
      %c0_i32_13 = arith.constant 0 : i32
      %43 = vector.broadcast %c0_i32_13 : i32 to vector<1x128xi32>
      %44 = arith.cmpi eq, %28, %43 : vector<1x128xi32>
      %45 = vector.shape_cast %42 : vector<8x1xf32> to vector<1x8x1xf32>
      %cst_14 = arith.constant dense<0.000000e+00> : vector<1xf32>
      %46 = vector.multi_reduction <add>, %45, %cst_14 [1, 2] : vector<1x8x1xf32> to vector<1xf32>
      %47 = vector.shape_cast %46 : vector<1xf32> to vector<1x1x1xf32>
      %48 = vector.extract %47[0, 0, 0] : f32 from vector<1x1x1xf32>
      %cst_15 = arith.constant 0.000000e+00 : f32
      %49 = vector.broadcast %48 : f32 to vector<1x128xf32>
      %50 = vector.broadcast %cst_15 : f32 to vector<1x128xf32>
      %51 = arith.select %44, %49, %50 : vector<1x128xi1>, vector<1x128xf32>
      %c0_16 = arith.constant 0 : index
      %c0_17 = arith.constant 0 : index
      %52 = vector.load %arg3[%c0_16, %c0_17] : memref<1x128xf32, #tpu.memory_space<vmem>>, vector<1x128xf32>
      tpu.vector_store %arg3[%c0_16, %c0_17], %51 {strides = array<i32>} : memref<1x128xf32, #tpu.memory_space<vmem>>, vector<1x128xf32>,
    } else {
    }
    return
  }
  func.func @transform_0(%arg0: i32) -> (i32, i32) {
    %c0_i32 = arith.constant 0 : i32
    %c0_i32_0 = arith.constant 0 : i32
    return %arg0, %c0_i32 : i32, i32
  }
  func.func @transform_1(%arg0: i32) -> (i32, i32) {
    %c0_i32 = arith.constant 0 : i32
    %c0_i32_0 = arith.constant 0 : i32
    return %arg0, %c0_i32 : i32, i32
  }
  func.func @transform_2(%arg0: i32) -> (i32, i32) {
    %c0_i32 = arith.constant 0 : i32
    %c0_i32_0 = arith.constant 0 : i32
    return %c0_i32, %arg0 : i32, i32
  }
}

</mosaic_0001>

<bundles_post_ra>
// kernel: tpu_custom_call.1
= control target key start
LH: loop header
LB: loop body
LE: loop exit
PB: predicated region body
PF: predicated region fallthrough
CT: control target
= control target key end

     0   :  { %vm14_vm0 = vcmask 56320   ;;  %s176_s0 = inlined_call_operand.vmem [shape: f32[3,7], index: 0, kind: input, shape index: {}]   ;;  %s177_s1 = inlined_call_operand.vmem [shape: s32[3,1], index: 1, kind: input, shape index: {}]   ;;  %s178_s2 = inlined_call_operand.hbm [shape: f32[1,128], index: 2, kind: output, shape index: {}]  }
   0x1   :  { %v12_v0 = vld [vmem:[%s176_s0] sm:$0xff] }
   0x2   :  { %7 = vsyncpa [#allocation3], 0  ;;  %v15_v1 = vsel %vm14_vm0, %v12_v0, -inf  ;;  %v138_v2 = vmov 0   ;;  %v13_v3 = vld [vmem:[%s177_s1] sm:$0xff]  ;;  %v27_v7 = vlaneseq  ;;  %vm75_vm3 = vcmask 7168  }
   0x3   :  { %107 = vset.pattern.permute.xlu0 %v138_v2  ;;  %s139_s0 = smov [#allocation2]  }
   0x4   :  { %16 = vmax.xlane.f32.xlu0 %v15_v1  ;;  %v28_v8 = vand.u32 127, %v27_v7  ;;  %v68_v23 = vshrl.u32 %v27_v7, 7  ;;  %s95_s1 = sshll.u32 %s139_s0, 4  ;;  %s96_s1 = int_to_ptr.vmem [resolvable:$true] %s95_s1 }
   0x5   :  { %s114_s14 = scalar_lea.vmem %s96_s1, 16  ;;  %s118_s15 = scalar_lea.vmem %s96_s1, 32 }
   0x6   :  { %vm72_vm2 = vcmp.lt.s32.totalorder %v68_v23, 3  ;;  %vm74_vm4 = vcmp.eq.s32.totalorder %v28_v8, 0  ;;  %p115_p0 = scmp.ne.s32.totalorder %s96_s1, %s114_s14  ;;  %p119_p1 = scmp.lt.s32.totalorder %s96_s1, %s96_s1 }
   0x7   :  { %p120_p2 = scmp.lt.s32.totalorder %s118_s15, %s114_s14 }
   0x9   :  { %p121_p3 = por %p120_p2, %p119_p1 }
   0xb   :  { %p122_p4 = pnand %p121_p3, %p115_p0 }
  0x1a   :  { %30 = vperm.xlu0 %107, %v13_v3  }
  0x91   :  { %v17_v4 = vpop.xlane.xlu0 %16 }
  0x92   :  { %v18_v5 = vsub.f32 %v12_v0, %v17_v4 }
  0x94   :  { %v19_v6 = vmul.f32 1.442695, %v18_v5 }
  0x96   :  { %108 = vpow2.f32 %v19_v6 }
  0x99   :  { %v31_v9 = vpop.permute.xlu0 %30 }
  0x9a   :  { %vm32_vm1 = vcmp.eq.s32.totalorder %v28_v8, %v31_v9 }
  0x9b   :  { %v33_v11 = vsel %vm32_vm1, %v12_v0, 0.0 }
  0x9c   :  { %v34_v13 = vsel %vm14_vm0, %v33_v11, 0.0 }
  0xa0   :  { %v109_v10 = vpop.eup %108 }
  0xa1   :  { %v21_v12 = vsel %vm14_vm0, %v109_v10, 0.0 }
  0xa2   :  { %22 = vadd.xlane.f32.xlu1 %v21_v12 }
  0xa6   :  { %35 = vadd.xlane.f32.xlu1 %v34_v13 }
 0x12f   :  { %v23_v14 = vpop.xlane.xlu1 %22 }
 0x130   :  { %110 = vlog2.f32 %v23_v14 }
 0x133   :  { %v36_v17 = vpop.xlane.xlu1 %35 }
 0x13a   :  { %v111_v15 = vpop.eup %110 }
 0x13b   :  { %v25_v16 = vmul.f32 0.6931472, %v111_v15 }
 0x13d   :  { %v26_v18 = vadd.f32 %v25_v16, %v17_v4 }
 0x13f   :  { %v37_v19 = vsub.f32 %v26_v18, %v36_v17 }
 0x141   :  { %v38_v20 = vsub.f32 0.0, %v37_v19 }
 0x143   :  { %v39_v21 = vmul.f32 1.442695, %v38_v20 }
 0x145   :  { %112 = vpow2.f32 %v39_v21 }
 0x14f   :  { %v113_v22 = vpop.eup %112 }
 0x150   :  { %v41_v24 = vsub.f32 1.0, %v113_v22 }
 0x152   :  { %v42_v25 = vmul.f32 %v41_v24, %v41_v24 }
 0x154   :  { %v43_v26 = vmul.f32 %v42_v25, %v37_v19 }
 0x156   :  { %v73_v27 = vsel %vm72_vm2, %v43_v26, 0.0 }
 0x157   :  { %v76_v28 = vsel %vm75_vm3, %v73_v27, 0.0 }
 0x158   :  { %77 = vadd.xlane.f32.xlu1 %v76_v28 }
 0x1e5   :  { %v78_v29 = vpop.xlane.xlu1 %77 }
 0x1e6   :  { %v79_v30 = vrot.slane %v78_v29, 4 }
 0x1e8   :  { %v80_v31 = vadd.f32 %v79_v30, %v78_v29 }
 0x1ea   :  { %v81_v32 = vrot.slane %v80_v31, 2 }
 0x1ec   :  { %v82_v33 = vadd.f32 %v81_v32, %v80_v31 }
 0x1ee   :  { %v83_v34 = vrot.slane %v82_v33, 1 }
 0x1f0   :  { %v84_v35 = vadd.f32 %v83_v34, %v82_v33 }
 0x1f2   :  { %103 = vpush %v84_v35 }
 0x223   :  { %s104_s13 = spop %103 }
 0x224   :  { %v86_v36 = vstv %s104_s13 }
 0x225   :  { %v87_v37 = vsel %vm74_vm4, %v86_v36, 0.0 }
 0x226   :  { %88 = vst [vmem:[#allocation2] sm:$0x1] %v87_v37 }
 0x227   :  { %125 = shalt.err (!%p122_p4)
}
 0x228   :  { %s126_s18 = scalar_lea.hbm %s178_s2, 16 }
 0x229   :  { %p127_p5 = scmp.ne.s32.totalorder %s178_s2, %s126_s18  ;;  %p130_p6 = scmp.lt.u32.totalorder %s126_s18, %s178_s2 }
 0x22b   :  { %p132_p7 = pnand %p130_p6, %p127_p5 }
 0x22d   :  { %135 = shalt.err (!%p132_p7)
}
 0x22e   :  { %98 = dma.vmem_to_hbm [thread:$0]  %s96_s1, 16, %s178_s2, [#allocation3]  }
 0x22f   :  { %136 = dma.done.wait [#allocation3], 16  }
 0x230   :  { %137 = vsyncadd [#allocation3], 4294967280 }
 0x231   :  { %102 = vsyncpa [#allocation3], 1 }

</bundles_post_ra>
